<compile_context>
chip_gen: v6e
topology: v6e:2x2x1
jax: 0.10.0
libtpu: 0.0.40
codegen_flags: <defaults>
</compile_context>

<pallas_src>
import functools

import numpy as np
import jax
import jax.numpy as jnp
from jax.experimental import pallas as pl
from jax.experimental.pallas import tpu as pltpu

EPS = 1e-5  # PyTorch BatchNorm1d default eps


# --------------------------------------------------------------------------- #
# Shared math (used by the Pallas kernel with bf16 MXU operands and by the     #
# host-side all-f32 packing check)                                             #
# --------------------------------------------------------------------------- #
def _bn_relu(x, gamma, beta):
    """Training-mode BatchNorm1d over NCV + ReLU. Single-pass stats
    (sum / sum-of-squares), rsqrt on the EUP, scale/shift hoisted."""
    n = x.shape[0] * x.shape[2]
    inv_n = 1.0 / float(n)
    s = jnp.sum(x, axis=(0, 2), keepdims=True)
    ss = jnp.sum(x * x, axis=(0, 2), keepdims=True)
    mean = s * inv_n
    var = ss * inv_n - mean * mean                    # biased var (PyTorch train)
    scale = gamma * jax.lax.rsqrt(var + EPS)          # (1, C, 1)
    shift = beta - mean * scale                       # (1, C, 1)
    return jnp.maximum(x * scale + shift, 0.0)


def _apply_laplacian(x_mx, Lt_mx):
    """out[b,c,u] = sum_v x[b,c,v] * Lt[v,u]  ==  (B*C, V) @ L^T done as one
    un-batched MXU contraction; rhs is contracted on its FIRST axis so no
    rhs transpose is needed, V stays on the lane axis, f32 accumulation."""
    return jnp.einsum('bcv,vu->bcu', x_mx, Lt_mx,
                      preferred_element_type=jnp.float32)


def _channel_matmul(w_mx, x_mx):
    """y[b,o,v] = sum_c w[o,c] * x[b,c,v] as ONE batched dot_general (weight
    broadcast over the tiny batch dim); result lands directly in (B, O, V)
    with V lane-dense — no stack / relayout."""
    B = x_mx.shape[0]
    w_b = jnp.broadcast_to(w_mx[None], (B,) + tuple(w_mx.shape))
    return jnp.einsum('boc,bcv->bov', w_b, x_mx,
                      preferred_element_type=jnp.float32)


def _cheb_basis(x_f32, Lt_mx, K, mxu_dtype):
    """Chebyshev orders concatenated k-major along channels, in MXU dtype.

    Each order is cast to `mxu_dtype` exactly once (reused for the next
    Laplacian matmul and for the concat); the recursion accumulates in f32.
    Returns (B, K*Fin, V) in mxu_dtype.
    """
    x0_mx = x_f32.astype(mxu_dtype)
    xs = [x0_mx]
    if K > 1:
        x_prev_f = x_f32
        x_cur_f = _apply_laplacian(x0_mx, Lt_mx)            # f32
        x_cur_mx = x_cur_f.astype(mxu_dtype)
        xs.append(x_cur_mx)
        for _ in range(2, K):
            x_nxt_f = 2.0 * _apply_laplacian(x_cur_mx, Lt_mx) - x_prev_f
            x_nxt_mx = x_nxt_f.astype(mxu_dtype)
            xs.append(x_nxt_mx)
            x_prev_f, x_cur_f, x_cur_mx = x_cur_f, x_nxt_f, x_nxt_mx
    return xs[0] if K == 1 else jnp.concatenate(xs, axis=1)


def _block_math(x, Lt_mx, g1, b1, w1sc_mx, g2, b2, w2_mx, K, P, mxu_dtype):
    """Full pre-activation block. x: (B, Cin, V) f32. Returns (B, P, V) f32."""
    # out = relu(bn1(x))
    h = _bn_relu(x, g1, b1)

    # conv1 + fused 1x1-conv shortcut: one (2P)-row contraction over K*Cin.
    xk1 = _cheb_basis(h, Lt_mx, K, mxu_dtype)               # (B, K*Cin, V)
    y1sc = _channel_matmul(w1sc_mx, xk1)                    # (B, 2P, V) f32
    y1 = y1sc[:, :P, :]                                     # conv1 (pool1 is id)
    sc = y1sc[:, P:, :]                                     # shortcut (pool2 is id)

    # out = conv2(relu(bn2(out)))
    h2 = _bn_relu(y1, g2, b2)
    xk2 = _cheb_basis(h2, Lt_mx, K, mxu_dtype)              # (B, K*P, V)
    y2 = _channel_matmul(w2_mx, xk2)                        # (B, P, V)

    # out += shortcut   (lane-dense f32 result, V on lanes)
    return y2 + sc


# --------------------------------------------------------------------------- #
# Pallas kernel + wrapper                                                      #
# --------------------------------------------------------------------------- #
def _block_kernel(K, P, x_ref, Lt_ref, g1_ref, b1_ref, w1sc_ref,
                  g2_ref, b2_ref, w2_ref, o_ref):
    # L^T and all weights arrive already in bf16 (cast on the host).
    o_ref[...] = _block_math(
        x_ref[...], Lt_ref[...], g1_ref[...], b1_ref[...], w1sc_ref[...],
        g2_ref[...], b2_ref[...], w2_ref[...], K, P, jnp.bfloat16)


def _pack_weights(W1, W2, Wsc, Cin, P, K):
    """Repack PyTorch Linear weights (Fout, Fin*K), column = fin*K + k, into
    k-major (Fout, K*Fin), column = k*Fin + fin, and fuse the 1x1 shortcut
    conv as P extra output rows of conv1 (non-zero only on the k=0 block)."""
    w1_km = jnp.transpose(W1.reshape(P, Cin, K), (0, 2, 1)).reshape(P, K * Cin)
    w2_km = jnp.transpose(W2.reshape(P, P, K), (0, 2, 1)).reshape(P, K * P)
    wsc_pad = jnp.concatenate(
        [Wsc, jnp.zeros((P, (K - 1) * Cin), W1.dtype)], axis=1)   # (P, K*Cin)
    w1sc_km = jnp.concatenate([w1_km, wsc_pad], axis=0)           # (2P, K*Cin)
    return w1sc_km, w2_km


def cheb_preact_block(x_bcv, L_scaled, params, K):
    """x_bcv: (B, in_planes, V) PyTorch NCV layout. Returns (B, planes, V)."""
    B, Cin, V = x_bcv.shape
    W1, W2, Wsc = params['W1'], params['W2'], params['Wsc']
    P = W1.shape[0]

    w1sc_km, w2_km = _pack_weights(W1, W2, Wsc, Cin, P, K)
    # Pass L pre-transposed (explicitly — stays correct for non-symmetric L)
    # and pre-cast to bf16 so the kernel does no rhs transpose and no pack.
    Lt_bf = jnp.transpose(L_scaled).astype(jnp.bfloat16)

    vmem = pl.BlockSpec(memory_space=pltpu.MemorySpace.VMEM)
    # TODO(synk): for large B/V add a real grid (tile V / batch, 'parallel'
    # dimension_semantics so v7x's second TensorCore is used) with a two-pass
    # BatchNorm (stats pass then normalize) and an explicit vmem_limit_bytes;
    # at these shapes the whole block fits in VMEM and is fixed-overhead bound.
    return pl.pallas_call(
        functools.partial(_block_kernel, K, P),
        out_shape=jax.ShapeDtypeStruct((B, P, V), jnp.float32),
        in_specs=[vmem] * 8,
        out_specs=vmem,
    )(x_bcv, Lt_bf,
      params['g1'].reshape(1, Cin, 1), params['b1'].reshape(1, Cin, 1),
      w1sc_km.astype(jnp.bfloat16),
      params['g2'].reshape(1, P, 1), params['b2'].reshape(1, P, 1),
      w2_km.astype(jnp.bfloat16))


# --------------------------------------------------------------------------- #
# Plain-JAX reference (mirrors the PyTorch permute/view path exactly, f32)     #
# --------------------------------------------------------------------------- #
def _cheb_conv_ref(x_bcv, L, W, K):
    B, Fin, V = x_bcv.shape
    xt = jnp.transpose(x_bcv, (0, 2, 1))                       # (B, V, Fin)
    x0 = jnp.transpose(xt, (1, 2, 0)).reshape(V, Fin * B)
    xs = [x0]
    if K > 1:
        xs.append(L @ x0)
    for _ in range(2, K):
        xs.append(2.0 * (L @ xs[-1]) - xs[-2])
    Xs = jnp.stack(xs, 0).reshape(K, V, Fin, B)
    Xs = jnp.transpose(Xs, (3, 1, 2, 0)).reshape(B * V, Fin * K)
    y = Xs @ W.T
    return jnp.transpose(y.reshape(B, V, -1), (0, 2, 1))       # (B, Fout, V)


def _block_ref(x, L, g1, b1, W1, g2, b2, W2, Wsc, K):
    def bn_relu(z, g, b):
        m = z.mean(axis=(0, 2), keepdims=True)
        v = ((z - m) ** 2).mean(axis=(0, 2), keepdims=True)
        zh = (z - m) / jnp.sqrt(v + EPS) * g[None, :, None] + b[None, :, None]
        return jnp.maximum(zh, 0.0)

    out = bn_relu(x, g1, b1)
    sc = jnp.einsum('oc,bcv->bov', Wsc, out)   # Conv1d 1x1, MaxPool1d(1) identity
    out = _cheb_conv_ref(out, L, W1, K)        # conv1, pool1 identity
    out = _cheb_conv_ref(bn_relu(out, g2, b2), L, W2, K)
    return out + sc


# --------------------------------------------------------------------------- #
# Deterministic setup + run                                                    #
# --------------------------------------------------------------------------- #
def build_rescaled_laplacian(V):
    # ring graph -> normalized Laplacian -> lmax_L + rescale_L (2*L/lmax - I)
    A = np.zeros((V, V), np.float32)
    idx = np.arange(V)
    A[idx, (idx + 1) % V] = 1.0
    A[idx, (idx - 1) % V] = 1.0
    d = A.sum(1)
    Dm12 = np.diag(1.0 / np.sqrt(d)).astype(np.float32)
    Lap = np.eye(V, dtype=np.float32) - Dm12 @ A @ Dm12
    lmax = float(np.linalg.eigvalsh(Lap).max())
    Ls = 2.0 * Lap / lmax - np.eye(V, dtype=np.float32)
    return jnp.asarray(Ls, jnp.float32)


if __name__ == "__main__":
    # in_planes=8, planes=16, 128-vertex graph, K=3, stride=1.
    # V=128 keeps the lane axis dense; channel counts are sublane (8) aligned.
    B, Cin, P, V, K = 2, 8, 16, 128, 3

    key = jax.random.PRNGKey(0)
    k_x, k_w1, k_w2, k_sc = jax.random.split(key, 4)

    x = jax.random.normal(k_x, (B, Cin, V), jnp.float32)
    L = build_rescaled_laplacian(V)

    # BatchNorm params (PyTorch default init)
    g1, b1 = jnp.ones((Cin,), jnp.float32), jnp.zeros((Cin,), jnp.float32)
    g2, b2 = jnp.ones((P,), jnp.float32), jnp.zeros((P,), jnp.float32)

    # ChebConv linear weights: (Fout, Fin*K), uniform(-scale, scale)
    scale1 = float(np.sqrt(2.0 / (Cin + P)))
    W1 = jax.random.uniform(k_w1, (P, K * Cin), jnp.float32, -scale1, scale1)
    scale2 = float(np.sqrt(2.0 / (P + P)))
    W2 = jax.random.uniform(k_w2, (P, K * P), jnp.float32, -scale2, scale2)

    # shortcut Conv1d(Cin->P, kernel=1, bias=False): uniform(+/- 1/sqrt(fan_in))
    bsc = 1.0 / float(np.sqrt(Cin))
    Wsc = jax.random.uniform(k_sc, (P, Cin), jnp.float32, -bsc, bsc)

    params = dict(g1=g1, b1=b1, g2=g2, b2=b2, W1=W1, W2=W2, Wsc=Wsc)

    out = jax.block_until_ready(cheb_preact_block(x, L, params, K))
    ref = jax.block_until_ready(_block_ref(x, L, g1, b1, W1, g2, b2, W2, Wsc, K))

    assert out.shape == (B, P, V), out.shape
    out_np, ref_np = np.asarray(out), np.asarray(ref)
    ref_scale = float(np.max(np.abs(ref_np)))

    # Tight-tolerance all-f32 check of the weight re-packing, fused shortcut and
    # one-pass BN math (independent of bf16 rounding) against the PyTorch-mirror
    # reference — catches packing/layout bugs the loose bf16 tolerance could hide.
    w1sc_km, w2_km = _pack_weights(W1, W2, Wsc, Cin, P, K)
    chk = jax.block_until_ready(_block_math(
        x, jnp.transpose(L),
        g1.reshape(1, Cin, 1), b1.reshape(1, Cin, 1), w1sc_km,
        g2.reshape(1, P, 1), b2.reshape(1, P, 1), w2_km, K, P, jnp.float32))
    err_f32 = float(np.max(np.abs(np.asarray(chk) - ref_np)))
    if not np.isfinite(err_f32) or err_f32 > 1e-3 * max(ref_scale, 1.0):
        raise AssertionError(
            f"f32 packing-check does not match reference: max abs err "
            f"{err_f32:.4e}, ref scale {ref_scale:.4e}")

    # bf16 MXU operands vs. the all-f32 reference -> loosened tolerance.
    err = float(np.max(np.abs(out_np - ref_np)))
    if not np.isfinite(err) or err > 5e-2 * max(ref_scale, 1.0):
        raise AssertionError(
            f"Pallas kernel does not match pure-JAX reference: "
            f"max abs err {err:.4e}, ref scale {ref_scale:.4e}")

    print("KERNEL_OK")
</pallas_src>

<mosaic_0001>
module attributes {stable_mosaic.version = 11 : i64} {
  func.func @_block_kernel(%arg0: memref<2x8x128xf32, #tpu.memory_space<vmem>>, %arg1: memref<128x128xbf16, #tpu.memory_space<vmem>>, %arg2: memref<1x8x1xf32, #tpu.memory_space<vmem>>, %arg3: memref<1x8x1xf32, #tpu.memory_space<vmem>>, %arg4: memref<32x24xbf16, #tpu.memory_space<vmem>>, %arg5: memref<1x16x1xf32, #tpu.memory_space<vmem>>, %arg6: memref<1x16x1xf32, #tpu.memory_space<vmem>>, %arg7: memref<16x48xbf16, #tpu.memory_space<vmem>>, %arg8: memref<2x16x128xf32, #tpu.memory_space<vmem>>) attributes {dimension_semantics = [], scalar_prefetch = 0 : i64, scratch_operands = 0 : i64, tpu.core_type = #tpu.core_type<tc>} {
    %c0 = arith.constant 0 : index
    %c0_0 = arith.constant 0 : index
    %c0_1 = arith.constant 0 : index
    %0 = vector.load %arg0[%c0, %c0_0, %c0_1] : memref<2x8x128xf32, #tpu.memory_space<vmem>>, vector<2x8x128xf32>
    %c0_2 = arith.constant 0 : index
    %c0_3 = arith.constant 0 : index
    %1 = vector.load %arg1[%c0_2, %c0_3] : memref<128x128xbf16, #tpu.memory_space<vmem>>, vector<128x128xbf16>
    %c0_4 = arith.constant 0 : index
    %c0_5 = arith.constant 0 : index
    %c0_6 = arith.constant 0 : index
    %2 = vector.load %arg2[%c0_4, %c0_5, %c0_6] : memref<1x8x1xf32, #tpu.memory_space<vmem>>, vector<1x8x1xf32>
    %c0_7 = arith.constant 0 : index
    %c0_8 = arith.constant 0 : index
    %c0_9 = arith.constant 0 : index
    %3 = vector.load %arg3[%c0_7, %c0_8, %c0_9] : memref<1x8x1xf32, #tpu.memory_space<vmem>>, vector<1x8x1xf32>
    %c0_10 = arith.constant 0 : index
    %c0_11 = arith.constant 0 : index
    %4 = vector.load %arg4[%c0_10, %c0_11] : memref<32x24xbf16, #tpu.memory_space<vmem>>, vector<32x24xbf16>
    %c0_12 = arith.constant 0 : index
    %c0_13 = arith.constant 0 : index
    %c0_14 = arith.constant 0 : index
    %5 = vector.load %arg5[%c0_12, %c0_13, %c0_14] : memref<1x16x1xf32, #tpu.memory_space<vmem>>, vector<1x16x1xf32>
    %c0_15 = arith.constant 0 : index
    %c0_16 = arith.constant 0 : index
    %c0_17 = arith.constant 0 : index
    %6 = vector.load %arg6[%c0_15, %c0_16, %c0_17] : memref<1x16x1xf32, #tpu.memory_space<vmem>>, vector<1x16x1xf32>
    %c0_18 = arith.constant 0 : index
    %c0_19 = arith.constant 0 : index
    %7 = vector.load %arg7[%c0_18, %c0_19] : memref<16x48xbf16, #tpu.memory_space<vmem>>, vector<16x48xbf16>
    %cst = arith.constant dense<0.000000e+00> : vector<8xf32>
    %8 = vector.multi_reduction <add>, %0, %cst [0, 2] : vector<2x8x128xf32> to vector<8xf32>
    %9 = vector.shape_cast %8 : vector<8xf32> to vector<1x8x1xf32>
    %10 = arith.mulf %0, %0 : vector<2x8x128xf32>
    %cst_20 = arith.constant dense<0.000000e+00> : vector<8xf32>
    %11 = vector.multi_reduction <add>, %10, %cst_20 [0, 2] : vector<2x8x128xf32> to vector<8xf32>
    %12 = vector.shape_cast %11 : vector<8xf32> to vector<1x8x1xf32>
    %cst_21 = arith.constant 3.906250e-03 : f32
    %13 = vector.broadcast %cst_21 : f32 to vector<1x8x1xf32>
    %14 = arith.mulf %9, %13 : vector<1x8x1xf32>
    %cst_22 = arith.constant 3.906250e-03 : f32
    %15 = vector.broadcast %cst_22 : f32 to vector<1x8x1xf32>
    %16 = arith.mulf %12, %15 : vector<1x8x1xf32>
    %17 = arith.mulf %14, %14 : vector<1x8x1xf32>
    %18 = arith.subf %16, %17 : vector<1x8x1xf32>
    %cst_23 = arith.constant 9.99999974E-6 : f32
    %19 = vector.broadcast %cst_23 : f32 to vector<1x8x1xf32>
    %20 = arith.addf %18, %19 : vector<1x8x1xf32>
    %21 = math.rsqrt %20 : vector<1x8x1xf32>
    %22 = arith.mulf %2, %21 : vector<1x8x1xf32>
    %23 = arith.mulf %14, %22 : vector<1x8x1xf32>
    %24 = arith.subf %3, %23 : vector<1x8x1xf32>
    %25 = vector.broadcast %22 : vector<1x8x1xf32> to vector<2x8x128xf32>
    %26 = arith.mulf %0, %25 : vector<2x8x128xf32>
    %27 = vector.broadcast %24 : vector<1x8x1xf32> to vector<2x8x128xf32>
    %28 = arith.addf %26, %27 : vector<2x8x128xf32>
    %cst_24 = arith.constant 0.000000e+00 : f32
    %29 = vector.broadcast %cst_24 : f32 to vector<2x8x128xf32>
    %30 = arith.maximumf %28, %29 : vector<2x8x128xf32>
    %31 = arith.truncf %30 : vector<2x8x128xf32> to vector<2x8x128xbf16>
    "tpu.trace_start"() <{level = 10 : i32, message = "bcv,vu->bcu"}> : () -> ()
    %cst_25 = arith.constant dense<0.000000e+00> : vector<2x8x128xf32>
    %32 = tpu.matmul %31, %1, %cst_25 {dimension_numbers = #tpu.dot_dimension_numbers<[2], [0], [0, 1], [1], [0, 0, 0, 1, 1, 1], [], []>} : vector<2x8x128xbf16>, vector<128x128xbf16>, vector<2x8x128xf32> -> vector<2x8x128xf32>
    "tpu.trace_stop"() : () -> ()
    %33 = arith.truncf %32 : vector<2x8x128xf32> to vector<2x8x128xbf16>
    "tpu.trace_start"() <{level = 10 : i32, message = "bcv,vu->bcu"}> : () -> ()
    %cst_26 = arith.constant dense<0.000000e+00> : vector<2x8x128xf32>
    %34 = tpu.matmul %33, %1, %cst_26 {dimension_numbers = #tpu.dot_dimension_numbers<[2], [0], [0, 1], [1], [0, 0, 0, 1, 1, 1], [], []>} : vector<2x8x128xbf16>, vector<128x128xbf16>, vector<2x8x128xf32> -> vector<2x8x128xf32>
    "tpu.trace_stop"() : () -> ()
    %cst_27 = arith.constant 2.000000e+00 : f32
    %35 = vector.broadcast %cst_27 : f32 to vector<2x8x128xf32>
    %36 = arith.mulf %35, %34 : vector<2x8x128xf32>
    %37 = arith.subf %36, %30 : vector<2x8x128xf32>
    %38 = arith.truncf %37 : vector<2x8x128xf32> to vector<2x8x128xbf16>
    %39 = tpu.concatenate %31, %33, %38 in 1 : vector<2x8x128xbf16>, vector<2x8x128xbf16>, vector<2x8x128xbf16> -> vector<2x24x128xbf16>
    %40 = vector.shape_cast %4 : vector<32x24xbf16> to vector<1x32x24xbf16>
    %41 = vector.shape_cast %40 : vector<1x32x24xbf16> to vector<1x32x24xbf16>
    %42 = vector.broadcast %41 : vector<1x32x24xbf16> to vector<2x32x24xbf16>
    "tpu.trace_start"() <{level = 10 : i32, message = "boc,bcv->bov"}> : () -> ()
    %cst_28 = arith.constant dense<0.000000e+00> : vector<2x32x128xf32>
    %43 = tpu.matmul %42, %39, %cst_28 {dimension_numbers = #tpu.dot_dimension_numbers<[2], [1], [1], [2], [0, 0, 0, 1, 1, 2], [0], [0]>} : vector<2x32x24xbf16>, vector<2x24x128xbf16>, vector<2x32x128xf32> -> vector<2x32x128xf32>
    "tpu.trace_stop"() : () -> ()
    %44 = vector.extract_strided_slice %43 {offsets = [0, 0, 0], sizes = [2, 16, 128], strides = [1, 1, 1]} : vector<2x32x128xf32> to vector<2x16x128xf32>
    %45 = vector.extract_strided_slice %43 {offsets = [0, 16, 0], sizes = [2, 16, 128], strides = [1, 1, 1]} : vector<2x32x128xf32> to vector<2x16x128xf32>
    %cst_29 = arith.constant dense<0.000000e+00> : vector<16xf32>
    %46 = vector.multi_reduction <add>, %44, %cst_29 [0, 2] : vector<2x16x128xf32> to vector<16xf32>
    %47 = vector.shape_cast %46 : vector<16xf32> to vector<1x16x1xf32>
    %48 = arith.mulf %44, %44 : vector<2x16x128xf32>
    %cst_30 = arith.constant dense<0.000000e+00> : vector<16xf32>
    %49 = vector.multi_reduction <add>, %48, %cst_30 [0, 2] : vector<2x16x128xf32> to vector<16xf32>
    %50 = vector.shape_cast %49 : vector<16xf32> to vector<1x16x1xf32>
    %cst_31 = arith.constant 3.906250e-03 : f32
    %51 = vector.broadcast %cst_31 : f32 to vector<1x16x1xf32>
    %52 = arith.mulf %47, %51 : vector<1x16x1xf32>
    %cst_32 = arith.constant 3.906250e-03 : f32
    %53 = vector.broadcast %cst_32 : f32 to vector<1x16x1xf32>
    %54 = arith.mulf %50, %53 : vector<1x16x1xf32>
    %55 = arith.mulf %52, %52 : vector<1x16x1xf32>
    %56 = arith.subf %54, %55 : vector<1x16x1xf32>
    %cst_33 = arith.constant 9.99999974E-6 : f32
    %57 = vector.broadcast %cst_33 : f32 to vector<1x16x1xf32>
    %58 = arith.addf %56, %57 : vector<1x16x1xf32>
    %59 = math.rsqrt %58 : vector<1x16x1xf32>
    %60 = arith.mulf %5, %59 : vector<1x16x1xf32>
    %61 = arith.mulf %52, %60 : vector<1x16x1xf32>
    %62 = arith.subf %6, %61 : vector<1x16x1xf32>
    %63 = vector.broadcast %60 : vector<1x16x1xf32> to vector<2x16x128xf32>
    %64 = arith.mulf %44, %63 : vector<2x16x128xf32>
    %65 = vector.broadcast %62 : vector<1x16x1xf32> to vector<2x16x128xf32>
    %66 = arith.addf %64, %65 : vector<2x16x128xf32>
    %cst_34 = arith.constant 0.000000e+00 : f32
    %67 = vector.broadcast %cst_34 : f32 to vector<2x16x128xf32>
    %68 = arith.maximumf %66, %67 : vector<2x16x128xf32>
    %69 = arith.truncf %68 : vector<2x16x128xf32> to vector<2x16x128xbf16>
    "tpu.trace_start"() <{level = 10 : i32, message = "bcv,vu->bcu"}> : () -> ()
    %cst_35 = arith.constant dense<0.000000e+00> : vector<2x16x128xf32>
    %70 = tpu.matmul %69, %1, %cst_35 {dimension_numbers = #tpu.dot_dimension_numbers<[2], [0], [0, 1], [1], [0, 0, 0, 1, 1, 1], [], []>} : vector<2x16x128xbf16>, vector<128x128xbf16>, vector<2x16x128xf32> -> vector<2x16x128xf32>
    "tpu.trace_stop"() : () -> ()
    %71 = arith.truncf %70 : vector<2x16x128xf32> to vector<2x16x128xbf16>
    "tpu.trace_start"() <{level = 10 : i32, message = "bcv,vu->bcu"}> : () -> ()
    %cst_36 = arith.constant dense<0.000000e+00> : vector<2x16x128xf32>
    %72 = tpu.matmul %71, %1, %cst_36 {dimension_numbers = #tpu.dot_dimension_numbers<[2], [0], [0, 1], [1], [0, 0, 0, 1, 1, 1], [], []>} : vector<2x16x128xbf16>, vector<128x128xbf16>, vector<2x16x128xf32> -> vector<2x16x128xf32>
    "tpu.trace_stop"() : () -> ()
    %cst_37 = arith.constant 2.000000e+00 : f32
    %73 = vector.broadcast %cst_37 : f32 to vector<2x16x128xf32>
    %74 = arith.mulf %73, %72 : vector<2x16x128xf32>
    %75 = arith.subf %74, %68 : vector<2x16x128xf32>
    %76 = arith.truncf %75 : vector<2x16x128xf32> to vector<2x16x128xbf16>
    %77 = tpu.concatenate %69, %71, %76 in 1 : vector<2x16x128xbf16>, vector<2x16x128xbf16>, vector<2x16x128xbf16> -> vector<2x48x128xbf16>
    %78 = vector.shape_cast %7 : vector<16x48xbf16> to vector<1x16x48xbf16>
    %79 = vector.shape_cast %78 : vector<1x16x48xbf16> to vector<1x16x48xbf16>
    %80 = vector.broadcast %79 : vector<1x16x48xbf16> to vector<2x16x48xbf16>
    "tpu.trace_start"() <{level = 10 : i32, message = "boc,bcv->bov"}> : () -> ()
    %cst_38 = arith.constant dense<0.000000e+00> : vector<2x16x128xf32>
    %81 = tpu.matmul %80, %77, %cst_38 {dimension_numbers = #tpu.dot_dimension_numbers<[2], [1], [1], [2], [0, 0, 0, 1, 1, 2], [0], [0]>} : vector<2x16x48xbf16>, vector<2x48x128xbf16>, vector<2x16x128xf32> -> vector<2x16x128xf32>
    "tpu.trace_stop"() : () -> ()
    %82 = arith.addf %81, %45 : vector<2x16x128xf32>
    %c0_39 = arith.constant 0 : index
    %c0_40 = arith.constant 0 : index
    %c0_41 = arith.constant 0 : index
    %83 = vector.load %arg8[%c0_39, %c0_40, %c0_41] : memref<2x16x128xf32, #tpu.memory_space<vmem>>, vector<2x16x128xf32>
    tpu.vector_store %arg8[%c0_39, %c0_40, %c0_41], %82 {strides = array<i32>} : memref<2x16x128xf32, #tpu.memory_space<vmem>>, vector<2x16x128xf32>,
    return
  }
}

</mosaic_0001>

<bundles_post_ra>
// kernel: tpu_custom_call.1
= control target key start
LH: loop header
LB: loop body
LE: loop exit
PB: predicated region body
PF: predicated region fallthrough
CT: control target
= control target key end

     0   :  { %s1146_s0 = inlined_call_operand.vmem [shape: f32[2,8,128], index: 0, kind: input, shape index: {}]   ;;  %s1147_s1 = inlined_call_operand.vmem [shape: bf16[128,128], index: 1, kind: input, shape index: {}]   ;;  %s1148_s2 = inlined_call_operand.vmem [shape: f32[1,8,1], index: 2, kind: input, shape index: {}]   ;;  %s1149_s3 = inlined_call_operand.vmem [shape: f32[1,8,1], index: 3, kind: input, shape index: {}]   ;;  %s1150_s4 = inlined_call_operand.vmem [shape: bf16[32,24], index: 4, kind: input, shape index: {}]   ;;  %s1151_s5 = inlined_call_operand.vmem [shape: f32[1,16,1], index: 5, kind: input, shape index: {}]   ;;  %s1152_s6 = inlined_call_operand.vmem [shape: f32[1,16,1], index: 6, kind: input, shape index: {}]   ;;  %s1153_s7 = inlined_call_operand.vmem [shape: bf16[16,48], index: 7, kind: input, shape index: {}]   ;;  %s1154_s8 = inlined_call_operand.hbm [shape: f32[2,16,128], index: 8, kind: output, shape index: {}]  }
   0x1   :  { %v961_v0 = vld [vmem:[%s1146_s0] sm:$0xff]  ;;  %v966_v1 = vld [vmem:[%s1146_s0 + $0x8] sm:$0xff] }
   0x2   :  { %v61_v2 = vadd.f32 %v966_v1, %v961_v0  ;;  %v64_v3 = vmul.f32 %v961_v0, %v961_v0  ;;  %v65_v4 = vmul.f32 %v966_v1, %v966_v1 }
   0x4   :  { %62 = vadd.xlane.f32.xlu0 %v61_v2  ;;  %v66_v5 = vadd.f32 %v65_v4, %v64_v3 }
   0x8   :  { %67 = vadd.xlane.f32.xlu0 %v66_v5 }
   0x9   :  { %13 = vsyncpa [#allocation3], 0  ;;  %v907_v6 = vmov 0   ;;  %v977_v7 = vld [vmem:[%s1147_s1 + $0x38] sm:$0xff]   ;;  %v908_v8 = vmov 0.0   ;;  %v985_v9 = vld [vmem:[%s1147_s1 + $0x30] sm:$0xff]  }
   0xa   :  { %866 = vset.pattern.permute.xlu1 %v907_v6  ;;  %867 = vset.pattern.permute.xlu0 %v907_v6  ;;  %v994_v10 = vld [vmem:[%s1147_s1 + $0x28] sm:$0xff]   ;;  %v1003_v11 = vld [vmem:[%s1147_s1 + $0x20] sm:$0xff]   ;;  %v1012_v12 = vld [vmem:[%s1147_s1 + $0x18] sm:$0xff]   ;;  %vm909_vm0 = vmmov 0   ;;  %vm267_vm1 = vcmask 195584   ;;  %vm248_vm2 = vcmask 1043456  }
   0xb   :  { %742 = vmatprep.subr.bf16.mxu0 %v908_v8  ;;  %762 = vmatprep.subr.bf16.mxu1 %v908_v8  ;;  %v1021_v13 = vld [vmem:[%s1147_s1 + $0x10] sm:$0xff]   ;;  %v49_v21 = vld [vmem:[%s1148_s2] sm:$0xff]  ;;  %v1036_v22 = vld [vmem:[%s1147_s1 + $0x8] sm:$0xff]   ;;  %vm561_vm3 = vcmask 392192   ;;  %s910_s13 = smov [#allocation2]  }
   0xc   :  { %743 = vmatpush3.bf16.msra.mxu0 %v977_v7  ;;  %763 = vmatpush3.bf16.msra.mxu1 %v977_v7  ;;  %v50_v25 = vld [vmem:[%s1149_s3] sm:$0xff]  ;;  %v877_v63 = vld [vmem:[%s1150_s4 + $0x8] sm:$0xff]   ;;  %s656_s14 = sshll.u32 %s910_s13, 4  ;;  %s657_s14 = int_to_ptr.vmem [resolvable:$true] %s656_s14 }
   0xd   :  { %744 = vmatprep.subr.bf16.mxu0 %v908_v8  ;;  %764 = vmatprep.subr.bf16.mxu1 %v908_v8  ;;  %v1048_v27 = vld [vmem:[%s1147_s1] sm:$0xff]   ;;  %p890_p1 = scmp.lt.s32.totalorder %s657_s14, %s657_s14 }
   0xe   :  { %758 = vmatprep.mubr.msk.bf16.mxu0 %vm909_vm0, %v908_v8  ;;  %778 = vmatprep.mubr.msk.bf16.mxu1 %vm909_vm0, %v908_v8  ;;  %v876_v43 = vld [vmem:[%s1150_s4] sm:$0xff]  }
  0x10   :  { %745 = vmatpush3.bf16.msra.mxu0 %v985_v9  ;;  %765 = vmatpush3.bf16.msra.mxu1 %v985_v9 }
  0x11   :  { %746 = vmatprep.subr.bf16.mxu0 %v908_v8  ;;  %766 = vmatprep.subr.bf16.mxu1 %v908_v8 }
  0x14   :  { %747 = vmatpush3.bf16.msra.mxu0 %v994_v10  ;;  %767 = vmatpush3.bf16.msra.mxu1 %v994_v10 }
  0x15   :  { %748 = vmatprep.subr.bf16.mxu0 %v908_v8  ;;  %768 = vmatprep.subr.bf16.mxu1 %v908_v8 }
  0x18   :  { %749 = vmatpush3.bf16.msra.mxu0 %v1003_v11  ;;  %769 = vmatpush3.bf16.msra.mxu1 %v1003_v11 }
  0x19   :  { %750 = vmatprep.subr.bf16.mxu0 %v908_v8  ;;  %770 = vmatprep.subr.bf16.mxu1 %v908_v8 }
  0x1c   :  { %751 = vmatpush3.bf16.msra.mxu0 %v1012_v12  ;;  %771 = vmatpush3.bf16.msra.mxu1 %v1012_v12 }
  0x1d   :  { %752 = vmatprep.subr.bf16.mxu0 %v908_v8  ;;  %772 = vmatprep.subr.bf16.mxu1 %v908_v8 }
  0x20   :  { %753 = vmatpush3.bf16.msra.mxu0 %v1021_v13  ;;  %773 = vmatpush3.bf16.msra.mxu1 %v1021_v13 }
  0x21   :  { %754 = vmatprep.subr.bf16.mxu0 %v908_v8  ;;  %774 = vmatprep.subr.bf16.mxu1 %v908_v8 }
  0x24   :  { %755 = vmatpush3.bf16.msra.mxu0 %v1036_v22  ;;  %775 = vmatpush3.bf16.msra.mxu1 %v1036_v22 }
  0x25   :  { %756 = vmatprep.subr.bf16.mxu0 %v908_v8  ;;  %776 = vmatprep.subr.bf16.mxu1 %v908_v8 }
  0x28   :  { %757 = vmatpush3.bf16.msra.mxu0 %v1048_v27  ;;  %777 = vmatpush3.bf16.msra.mxu1 %v1048_v27 }
  0x8d   :  { %v63_v14 = vpop.xlane.xlu0 %62 }
  0x8e   :  { %v69_v15 = vmul.f32 0.00390625, %v63_v14 }
  0x90   :  { %v71_v17 = vmul.f32 %v69_v15, %v69_v15 }
  0x91   :  { %v68_v16 = vpop.xlane.xlu0 %67 }
  0x92   :  { %v70_v18 = vmul.f32 0.00390625, %v68_v16 }
  0x94   :  { %v72_v19 = vsub.f32 %v70_v18, %v71_v17 }
  0x96   :  { %v73_v20 = vadd.f32 1e-05, %v72_v19 }
  0x98   :  { %879 = vrsqrt.f32 %v73_v20 }
  0xa5   :  { %v880_v23 = vpop.eup %879 }
  0xa6   :  { %v75_v24 = vmul.f32 %v880_v23, %v49_v21 }
  0xa8   :  { %80 = vperm.xlu1 %866, %v75_v24   ;;  %v76_v26 = vmul.f32 %v75_v24, %v69_v15 }
  0xaa   :  { %v77_v28 = vsub.f32 %v50_v25, %v76_v26 }
  0xac   :  { %87 = vperm.xlu1 %866, %v77_v28  }
 0x123   :  { %v81_v29 = vpop.permute.xlu1 %80 }
 0x124   :  { %v83_v30 = vmul.f32 %v81_v29, %v961_v0  ;;  %v84_v31 = vmul.f32 %v81_v29, %v966_v1 }
 0x127   :  { %v88_v32 = vpop.permute.xlu1 %87 }
 0x128   :  { %v90_v33 = vadd.f32 %v88_v32, %v83_v30  ;;  %v91_v34 = vadd.f32 %v88_v32, %v84_v31  ;;  %v55_v32 = vld [vmem:[%s1151_s5] sm:$0xff] }
 0x12a   :  { %v92_v35 = vmax.f32 %v90_v33, 0.0  ;;  %v93_v36 = vmax.f32 %v91_v34, 0.0 }
 0x12c   :  { %v686_v37 = vpack.c.bf16 %v93_v36, %v92_v35  ;;  %v94_v55 = vpack.c.bf16 %v92_v35, %v92_v35  ;;  %v95_v61 = vpack.c.bf16 %v93_v36, %v93_v36 }
 0x12e   :  { %759 = vmatmul.mubr.bf16.vlgmr.msra.gmra.mxu0 %v686_v37 }
 0x12f   :  { %786 = vmatprep.mubr.msk.bf16.mxu0 %vm267_vm1, %v876_v43 }
 0x1ee   :  { %v184_v38 = vpop.f32.mrf.mxu0 }
 0x1ef   :  { %v191_v44 = vpack.c.bf16 %v184_v38, %v184_v38 }
 0x1f0   :  { %v760_v39 = vpop.f32.mrf.mxu0 }
 0x1f1   :  { %v246_v49 = vrot.slane %v191_v44, 4  ;;  %v57_v39 = vld [vmem:[%s1152_s6] sm:$0xff] }
 0x1f2   :  { %v187_v40 = vpop.f32.mrf.mxu0 }
 0x1f3   :  { %v687_v41 = vpack.c.bf16 %v187_v40, %v184_v38  ;;  %v192_v50 = vpack.c.bf16 %v187_v40, %v187_v40  ;;  %v251_v59 = vsel %vm248_vm2, %v94_v55, %v246_v49  ;;  %v58_v40 = vld [vmem:[%s1152_s6 + $0x8] sm:$0xff] }
 0x1f4   :  { %v761_v42 = vpop.f32.mrf.mxu0 }
 0x1f5   :  { %779 = vmatmul.mubr.bf16.vlgmr.msra.gmra.mxu1 %v687_v41  ;;  %v247_v58 = vrot.slane %v192_v50, 4 }
 0x1f6   :  { %794 = vmatprep.mubr.msk.bf16.mxu1 %vm267_vm1, %v876_v43 }
 0x1f7   :  { %v255_v0 = vsel %vm248_vm2, %v95_v61, %v247_v58 }
 0x2b5   :  { %v233_v45 = vpop.f32.mrf.mxu1 }
 0x2b6   :  { %v240_v46 = vmul.f32 2.0, %v233_v45 }
 0x2b7   :  { %v780_v47 = vpop.f32.mrf.mxu1 }
 0x2b8   :  { %v242_v48 = vsub.f32 %v240_v46, %v92_v35  ;;  %v56_v35 = vld [vmem:[%s1151_s5 + $0x8] sm:$0xff] }
 0x2b9   :  { %v236_v51 = vpop.f32.mrf.mxu1 }
 0x2ba   :  { %v244_v52 = vpack.c.bf16 %v242_v48, %v242_v48  ;;  %v241_v53 = vmul.f32 2.0, %v236_v51 }
 0x2bb   :  { %v781_v54 = vpop.f32.mrf.mxu1 }
 0x2bc   :  { %v243_v56 = vsub.f32 %v241_v53, %v93_v36  ;;  %858 = vmatprep.subr.msk.bf16.mxu0 %vm248_vm2, %v244_v52  ;;  %v275_v57 = vsel %vm248_vm2, %v244_v52, 0 }
 0x2bd   :  { %783 = vmatpush3.bf16.msra.mxu0 %v275_v57 }
 0x2be   :  { %v245_v60 = vpack.c.bf16 %v243_v56, %v243_v56  ;;  %784 = vmatprep.subr.bf16.mxu0 %v251_v59 }
 0x2c0   :  { %859 = vmatprep.subr.msk.bf16.mxu1 %vm248_vm2, %v245_v60  ;;  %v327_v62 = vsel %vm248_vm2, %v245_v60, 0 }
 0x2c1   :  { %785 = vmatpush3.bf16.msra.mxu0 %v251_v59  ;;  %791 = vmatpush3.bf16.msra.mxu1 %v327_v62 }
 0x2c2   :  { %792 = vmatprep.subr.bf16.mxu1 %v255_v0  ;;  %798 = vmatprep.subr.bf16.mxu0 %v977_v7 }
 0x2c4   :  { %787 = vmatmul.mubr.msk.bf16.vlgmr.msra.gmra.mxu0 %vm267_vm1, %v877_v63 }
 0x2c5   :  { %793 = vmatpush3.bf16.msra.mxu1 %v255_v0  ;;  %799 = vmatpush3.bf16.msra.mxu0 %v977_v7 }
 0x2c6   :  { %800 = vmatprep.subr.bf16.mxu0 %v985_v9  ;;  %818 = vmatprep.subr.bf16.mxu1 %v977_v7 }
 0x2c8   :  { %795 = vmatmul.mubr.msk.bf16.vlgmr.msra.gmra.mxu1 %vm267_vm1, %v877_v63 }
 0x2c9   :  { %801 = vmatpush3.bf16.msra.mxu0 %v985_v9  ;;  %819 = vmatpush3.bf16.msra.mxu1 %v977_v7 }
 0x2ca   :  { %802 = vmatprep.subr.bf16.mxu0 %v994_v10  ;;  %820 = vmatprep.subr.bf16.mxu1 %v985_v9 }
 0x2cd   :  { %803 = vmatpush3.bf16.msra.mxu0 %v994_v10  ;;  %821 = vmatpush3.bf16.msra.mxu1 %v985_v9 }
 0x2ce   :  { %804 = vmatprep.subr.bf16.mxu0 %v1003_v11  ;;  %822 = vmatprep.subr.bf16.mxu1 %v994_v10 }
 0x2d1   :  { %805 = vmatpush3.bf16.msra.mxu0 %v1003_v11  ;;  %823 = vmatpush3.bf16.msra.mxu1 %v994_v10 }
 0x2d2   :  { %806 = vmatprep.subr.bf16.mxu0 %v1012_v12  ;;  %824 = vmatprep.subr.bf16.mxu1 %v1003_v11 }
 0x2d5   :  { %807 = vmatpush3.bf16.msra.mxu0 %v1012_v12  ;;  %825 = vmatpush3.bf16.msra.mxu1 %v1003_v11 }
 0x2d6   :  { %808 = vmatprep.subr.bf16.mxu0 %v1021_v13  ;;  %826 = vmatprep.subr.bf16.mxu1 %v1012_v12 }
 0x2d9   :  { %809 = vmatpush3.bf16.msra.mxu0 %v1021_v13  ;;  %827 = vmatpush3.bf16.msra.mxu1 %v1012_v12 }
 0x2da   :  { %810 = vmatprep.subr.bf16.mxu0 %v1036_v22  ;;  %828 = vmatprep.subr.bf16.mxu1 %v1021_v13 }
 0x2dd   :  { %811 = vmatpush3.bf16.msra.mxu0 %v1036_v22  ;;  %829 = vmatpush3.bf16.msra.mxu1 %v1021_v13 }
 0x2de   :  { %812 = vmatprep.subr.bf16.mxu0 %v1048_v27  ;;  %830 = vmatprep.subr.bf16.mxu1 %v1036_v22 }
 0x2e1   :  { %813 = vmatpush3.bf16.msra.mxu0 %v1048_v27  ;;  %831 = vmatpush3.bf16.msra.mxu1 %v1036_v22 }
 0x2e2   :  { %832 = vmatprep.subr.bf16.mxu1 %v1048_v27  ;;  %838 = vmatprep.subr.bf16.mxu0 %v908_v8 }
 0x2e5   :  { %833 = vmatpush3.bf16.msra.mxu1 %v1048_v27 }
 0x2e6   :  { %848 = vmatprep.subr.bf16.mxu1 %v908_v8 }
 0x384   :  { %v1108_v1 = vpop.f32.mrf.mxu0 }
 0x386   :  { %v311_v2 = vpop.f32.mrf.mxu0 }
 0x387   :  { %v384_v10 = vmul.f32 %v311_v2, %v311_v2 }
 0x388   :  { %v1110_v3 = vpop.f32.mrf.mxu1  ;;  %v1112_v4 = vpop.f32.mrf.mxu0 }
 0x38a   :  { %v363_v5 = vpop.f32.mrf.mxu1  ;;  %v314_v11 = vpop.f32.mrf.mxu0 }
 0x38b   :  { %v378_v6 = vadd.f32 %v363_v5, %v311_v2  ;;  %v386_v7 = vmul.f32 %v363_v5, %v363_v5  ;;  %v385_v16 = vmul.f32 %v314_v11, %v314_v11 }
 0x38c   :  { %v1114_v9 = vpop.f32.mrf.mxu1 }
 0x38d   :  { %379 = vadd.xlane.f32.xlu0 %v378_v6  ;;  %v388_v13 = vadd.f32 %v386_v7, %v384_v10 }
 0x38e   :  { %v366_v12 = vpop.f32.mrf.mxu1 }
 0x38f   :  { %v381_v14 = vadd.f32 %v366_v12, %v314_v11  ;;  %v387_v15 = vmul.f32 %v366_v12, %v366_v12 }
 0x391   :  { %389 = vadd.xlane.f32.xlu0 %v388_v13  ;;  %382 = vadd.xlane.f32.xlu1 %v381_v14  ;;  %v391_v17 = vadd.f32 %v387_v15, %v385_v16 }
 0x395   :  { %392 = vadd.xlane.f32.xlu0 %v391_v17 }
 0x416   :  { %v380_v18 = vpop.xlane.xlu0 %379 }
 0x417   :  { %v394_v19 = vmul.f32 0.00390625, %v380_v18 }
 0x419   :  { %v398_v22 = vmul.f32 %v394_v19, %v394_v19 }
 0x41a   :  { %v390_v20 = vpop.xlane.xlu0 %389  ;;  %v383_v21 = vpop.xlane.xlu1 %382 }
 0x41b   :  { %v396_v23 = vmul.f32 0.00390625, %v390_v20  ;;  %v395_v24 = vmul.f32 0.00390625, %v383_v21 }
 0x41d   :  { %v400_v25 = vsub.f32 %v396_v23, %v398_v22  ;;  %v399_v28 = vmul.f32 %v395_v24, %v395_v24  ;;  %v878_v23 = vld [vmem:[%s1153_s7] sm:$0xff]   ;;  %s885_s7 = scalar_lea.vmem %s657_s14, 512 }
 0x41e   :  { %v393_v26 = vpop.xlane.xlu0 %392  ;;  %p886_p0 = scmp.ne.s32.totalorder %s657_s14, %s885_s7  ;;  %p891_p2 = scmp.lt.s32.totalorder %s885_s7, %s885_s7 }
 0x41f   :  { %v402_v27 = vadd.f32 1e-05, %v400_v25  ;;  %v397_v29 = vmul.f32 0.00390625, %v393_v26 }
 0x420   :  { %p892_p3 = por %p891_p2, %p890_p1 }
 0x421   :  { %881 = vrsqrt.f32 %v402_v27  ;;  %v401_v30 = vsub.f32 %v397_v29, %v399_v28 }
 0x422   :  { %p893_p4 = pnand %p892_p3, %p886_p0 }
 0x423   :  { %v403_v31 = vadd.f32 1e-05, %v401_v30 }
 0x425   :  { %883 = vrsqrt.f32 %v403_v31 }
 0x42e   :  { %v882_v33 = vpop.eup %881 }
 0x42f   :  { %v406_v34 = vmul.f32 %v882_v33, %v55_v32 }
 0x431   :  { %414 = vperm.xlu0 %867, %v406_v34   ;;  %v408_v38 = vmul.f32 %v406_v34, %v394_v19 }
 0x432   :  { %v884_v36 = vpop.eup %883 }
 0x433   :  { %v407_v37 = vmul.f32 %v884_v36, %v56_v35  ;;  %v410_v42 = vsub.f32 %v57_v39, %v408_v38 }
 0x435   :  { %419 = vperm.xlu1 %866, %v407_v37   ;;  %v409_v41 = vmul.f32 %v407_v37, %v395_v24 }
 0x437   :  { %v411_v43 = vsub.f32 %v58_v40, %v409_v41 }
 0x439   :  { %428 = vperm.xlu1 %866, %v410_v42   ;;  %433 = vperm.xlu0 %867, %v411_v43  }
 0x4ac   :  { %v415_v44 = vpop.permute.xlu0 %414 }
 0x4ad   :  { %v422_v46 = vmul.f32 %v415_v44, %v311_v2  ;;  %v424_v47 = vmul.f32 %v415_v44, %v363_v5 }
 0x4b0   :  { %v420_v45 = vpop.permute.xlu1 %419 }
 0x4b1   :  { %v423_v48 = vmul.f32 %v420_v45, %v314_v11  ;;  %v425_v49 = vmul.f32 %v420_v45, %v366_v12 }
 0x4b4   :  { %v429_v50 = vpop.permute.xlu1 %428  ;;  %v434_v51 = vpop.permute.xlu0 %433 }
 0x4b5   :  { %v436_v52 = vadd.f32 %v429_v50, %v422_v46  ;;  %v438_v53 = vadd.f32 %v429_v50, %v424_v47  ;;  %v437_v54 = vadd.f32 %v434_v51, %v423_v48  ;;  %v439_v55 = vadd.f32 %v434_v51, %v425_v49 }
 0x4b7   :  { %v440_v56 = vmax.f32 %v436_v52, 0.0  ;;  %v442_v57 = vmax.f32 %v438_v53, 0.0  ;;  %v441_v58 = vmax.f32 %v437_v54, 0.0  ;;  %v443_v59 = vmax.f32 %v439_v55, 0.0 }
 0x4b9   :  { %v444_v60 = vpack.c.bf16 %v441_v58, %v440_v56  ;;  %v445_v61 = vpack.c.bf16 %v443_v59, %v442_v57 }
 0x4bb   :  { %814 = vmatprep.mubr.bf16.mxu0 %v444_v60 }
 0x4bc   :  { %815 = vmatmul.mubr.bf16.vlgmr.msra.gmra.mxu0 %v445_v61 }
 0x4bd   :  { %844 = vmatprep.mubr.msk.bf16.mxu0 %vm909_vm0, %v908_v8 }
 0x57c   :  { %v816_v62 = vpop.f32.mrf.mxu0 }
 0x57e   :  { %v480_v63 = vpop.f32.mrf.mxu0 }
 0x580   :  { %v817_v0 = vpop.f32.mrf.mxu0 }
 0x581   :  { %v496_v6 = vpack.c.bf16 %v817_v0, %v816_v62 }
 0x582   :  { %v483_v2 = vpop.f32.mrf.mxu0 }
 0x583   :  { %v495_v5 = vpack.c.bf16 %v483_v2, %v480_v63 }
 0x585   :  { %834 = vmatprep.mubr.bf16.mxu1 %v495_v5 }
 0x586   :  { %835 = vmatmul.mubr.bf16.vlgmr.msra.gmra.mxu1 %v496_v6 }
 0x587   :  { %854 = vmatprep.mubr.msk.bf16.mxu1 %vm909_vm0, %v908_v8 }
 0x646   :  { %v836_v7 = vpop.f32.mrf.mxu1 }
 0x647   :  { %v548_v11 = vmul.f32 2.0, %v836_v7 }
 0x648   :  { %v531_v10 = vpop.f32.mrf.mxu1 }
 0x649   :  { %v546_v13 = vmul.f32 2.0, %v531_v10  ;;  %v552_v16 = vsub.f32 %v548_v11, %v442_v57 }
 0x64a   :  { %v837_v12 = vpop.f32.mrf.mxu1 }
 0x64b   :  { %v549_v14 = vmul.f32 2.0, %v837_v12  ;;  %v550_v19 = vsub.f32 %v546_v13, %v440_v56 }
 0x64c   :  { %v534_v15 = vpop.f32.mrf.mxu1 }
 0x64d   :  { %v553_v17 = vsub.f32 %v549_v14, %v443_v59  ;;  %v547_v18 = vmul.f32 2.0, %v534_v15 }
 0x64f   :  { %v555_v20 = vpack.c.bf16 %v553_v17, %v552_v16  ;;  %v551_v21 = vsub.f32 %v547_v18, %v441_v58 }
 0x651   :  { %v554_v22 = vpack.c.bf16 %v551_v21, %v550_v19  ;;  %849 = vmatpush3.bf16.msra.mxu1 %v555_v20 }
 0x652   :  { %850 = vmatprep.subr.bf16.mxu1 %v908_v8 }
 0x653   :  { %839 = vmatpush3.bf16.msra.mxu0 %v554_v22 }
 0x654   :  { %840 = vmatprep.subr.bf16.mxu0 %v908_v8 }
 0x655   :  { %851 = vmatpush3.bf16.msra.mxu1 %v496_v6 }
 0x656   :  { %852 = vmatprep.subr.bf16.mxu1 %v908_v8 }
 0x657   :  { %841 = vmatpush3.bf16.msra.mxu0 %v495_v5 }
 0x658   :  { %842 = vmatprep.subr.bf16.mxu0 %v908_v8 }
 0x659   :  { %853 = vmatpush3.bf16.msra.mxu1 %v445_v61 }
 0x65b   :  { %843 = vmatpush3.bf16.msra.mxu0 %v444_v60 }
 0x65c   :  { %855 = vmatmul.mubr.msk.bf16.vlgmr.msra.gmra.mxu1 %vm561_vm3, %v878_v23 }
 0x65e   :  { %845 = vmatmul.mubr.msk.bf16.vlgmr.msra.gmra.mxu0 %vm561_vm3, %v878_v23 }
 0x71c   :  { %v640_v24 = vpop.f32.mrf.mxu1 }
 0x71d   :  { %v641_v25 = vadd.f32 %v1110_v3, %v640_v24 }
 0x71e   :  { %v599_v26 = vpop.f32.mrf.mxu0  ;;  %v856_v27 = vpop.f32.mrf.mxu1 }
 0x71f   :  { %649 = vst [vmem:[#allocation2 + $0x10] sm:$0xff] %v641_v25  ;;  %v600_v28 = vadd.f32 %v1108_v1, %v599_v26 }
 0x720   :  { %v846_v8 = vpop.f32.mrf.mxu0  ;;  %v643_v29 = vpop.f32.mrf.mxu1 }
 0x721   :  { %647 = vst [vmem:[#allocation2] sm:$0xff] %v600_v28  ;;  %v644_v30 = vadd.f32 %v1114_v9, %v643_v29 }
 0x722   :  { %v602_v31 = vpop.f32.mrf.mxu0  ;;  %v857_v32 = vpop.f32.mrf.mxu1 }
 0x723   :  { %650 = vst [vmem:[#allocation2 + $0x18] sm:$0xff] %v644_v30  ;;  %v603_v33 = vadd.f32 %v1112_v4, %v602_v31 }
 0x724   :  { %v847_v34 = vpop.f32.mrf.mxu0 }
 0x725   :  { %648 = vst [vmem:[#allocation2 + $0x8] sm:$0xff] %v603_v33 }
 0x726   :  { %896 = shalt.err (!%p893_p4)
}
 0x727   :  { %s911_s15 = smov 128   ;;  %s912_s16 = smov 8  }
 0x728   :  { %662 = dma.vmem_to_hbm [thread:$0]  %s657_s14, 512, %s1154_s8, [#allocation3], %s911_s15, %s911_s15, %s912_s16  }
 0x729   :  { %905 = dma.done.wait [#allocation3], 512  }
 0x72a   :  { %906 = vsyncadd [#allocation3], 4294966784 }
 0x72b   :  { %666 = vsyncpa [#allocation3], 1 }

</bundles_post_ra>
